<compile_context>
chip_gen: v6e
topology: v6e:2x2x1
jax: 0.10.0
libtpu: 0.0.40
codegen_flags: <defaults>
</compile_context>

<pallas_src>
import jax
import jax.numpy as jnp
from jax.experimental import pallas as pl
from jax.experimental.pallas import tpu as pltpu


# --------------------------------------------------------------------------------------
# Kernel
# --------------------------------------------------------------------------------------
def _rir_kernel(xr_ref, xt_ref, wr_ref, wt_ref, bias_ref, o_ref, xr_pad, xt_pad):
    """One batch sample per grid step.

    xr_ref, xt_ref : (1, H, W*Cin)        unpadded NHWC activations, (w, c) fused in lanes
    wr_ref, wt_ref : (3, W*Cin, W*Cout2)  per-ky banded weights (kx shift, lane pad, BN scale folded)
    bias_ref       : (1, W*Cout2)         folded BN bias, tiled over w
    o_ref          : (1, H, W*Cout2)      lane-dense output (W*Cout2 is a multiple of 128 here)
    xr_pad, xt_pad : (H+2, W*Cin)         VMEM scratch: row-padded copies of the inputs
    """
    H = o_ref.shape[1]
    mm_dtype = wr_ref.dtype  # matmul operand dtype (bf16 by default)

    zero_row = jnp.zeros((1, xr_pad.shape[1]), xr_pad.dtype)
    # Zero the halo rows unconditionally every step: scratch persists across grid steps and with
    # "parallel" semantics a second TensorCore never executes program_id == 0, so a pl.when-guarded
    # one-time init would be wrong.
    xr_pad[0:1, :] = zero_row
    xr_pad[H + 1:H + 2, :] = zero_row
    xt_pad[0:1, :] = zero_row
    xt_pad[H + 1:H + 2, :] = zero_row
    # In-kernel 1-row zero pad: a VMEM-only copy replaces the wrapper-side jnp.pad HBM round trip.
    xr_pad[1:H + 1, :] = xr_ref[0]
    xt_pad[1:H + 1, :] = xt_ref[0]

    # 3 ky row-slabs x 2 input branches -> 6 accumulating MXU contractions, one f32 accumulator.
    # The kx shift and the width (lane) zero-padding are folded into the banded weights, so the
    # slabs are used raw: no lane slices, no in-kernel concatenate.
    acc = jnp.zeros(o_ref.shape[1:], jnp.float32)  # (H, W*Cout2)
    for ky in range(3):  # static unroll
        acc += jnp.dot(xr_pad[ky:ky + H, :].astype(mm_dtype), wr_ref[ky],
                       preferred_element_type=jnp.float32)
        acc += jnp.dot(xt_pad[ky:ky + H, :].astype(mm_dtype), wt_ref[ky],
                       preferred_element_type=jnp.float32)

    # Epilogue: BN scale already folded into the weight columns; bias + ReLU in f32.
    o_ref[0] = jnp.maximum(acc + bias_ref[...], 0.0).astype(o_ref.dtype)


# --------------------------------------------------------------------------------------
# Parameter construction / one-time folding
# --------------------------------------------------------------------------------------
def make_rir_unit_params(key, in_channels, out_channels, stride=1):
    """Deterministic synthetic parameters (conv weights in HWIO, BN folded to scale/bias)."""
    if stride != 1:
        # TODO(synk): strided conv3x3 / strided 1x1 identity path is not implemented in Pallas.
        raise NotImplementedError("RiRUnit Pallas kernel currently supports stride == 1 only.")
    eps = 1e-5
    keys = jax.random.split(key, 13)

    def conv_w(k, kh, kw):
        return 0.1 * jax.random.normal(k, (kh, kw, in_channels, out_channels), jnp.float32)

    def bn_fold(ks):
        kg, kb, km, kv = ks
        gamma = 1.0 + 0.1 * jax.random.normal(kg, (out_channels,), jnp.float32)
        beta = 0.1 * jax.random.normal(kb, (out_channels,), jnp.float32)
        mean = 0.1 * jax.random.normal(km, (out_channels,), jnp.float32)
        var = jnp.abs(1.0 + 0.1 * jax.random.normal(kv, (out_channels,), jnp.float32))
        scale = gamma / jnp.sqrt(var + eps)
        bias = beta - mean * scale
        return scale, bias

    scale_res, bias_res = bn_fold(keys[4:8])
    scale_trans, bias_trans = bn_fold(keys[8:12])

    params = {
        "w_res_pass": conv_w(keys[0], 3, 3),
        "w_trans_pass": conv_w(keys[1], 3, 3),
        "w_res_cross": conv_w(keys[2], 3, 3),
        "w_trans_cross": conv_w(keys[3], 3, 3),
        "scale_res": scale_res, "bias_res": bias_res,
        "scale_trans": scale_trans, "bias_trans": bias_trans,
    }
    if in_channels != out_channels:
        params["w_id"] = conv_w(keys[12], 1, 1)  # conv1x1 identity resize
    return params


def prepare_rir_params(params, W, compute_dtype=jnp.bfloat16):
    """One-time parameter preprocessing (runs at load time, NOT inside the per-call jit).

    Produces:
      w_res_band   (3, W*Cin, W*Cout2)  x_res   -> [y_res | y_trans] contributions
      w_trans_band (3, W*Cin, W*Cout2)  x_trans -> [y_res | y_trans] contributions
      bias         (1, W*Cout2)         folded BN bias, tiled over w
    Folded into the weights: identity path (centre tap), branch fusion, BN scale, the kx shift
    and the width zero-padding (band structure).
    """
    Cin = params["w_res_pass"].shape[2]
    Cout = params["w_res_pass"].shape[3]
    Cout2 = 2 * Cout

    # Identity path -> centre tap of the res pass-through conv.
    w_res_pass = params["w_res_pass"]
    if "w_id" in params:
        w_res_pass = w_res_pass.at[1, 1].add(params["w_id"][0, 0])
    else:
        w_res_pass = w_res_pass.at[1, 1].add(jnp.eye(Cin, dtype=w_res_pass.dtype))

    # Branch fusion: output columns = [y_res outputs | y_trans outputs].
    w_res = jnp.concatenate([w_res_pass, params["w_res_cross"]], axis=3)         # (3,3,Cin,Cout2)
    w_trans = jnp.concatenate([params["w_trans_cross"], params["w_trans_pass"]], axis=3)

    # Fold BN scale into the weight columns (scale distributes over the conv sum incl. identity).
    scale = jnp.concatenate([params["scale_res"], params["scale_trans"]])        # (Cout2,)
    w_res = w_res * scale[None, None, None, :]
    w_trans = w_trans * scale[None, None, None, :]

    # Band matrix: band[kx, w_in, w_out] = 1 iff w_in == w_out + kx - 1.
    # Out-of-range taps simply have no row -> implements the width zero-padding.
    band = jnp.stack([jnp.eye(W, k=1 - kx, dtype=w_res.dtype) for kx in range(3)])  # (3, W, W)

    def to_band(w):  # (3,3,Cin,Cout2) -> (3, W*Cin, W*Cout2)
        return jnp.einsum("xvw,yxco->yvcwo", band, w).reshape(3, W * Cin, W * Cout2)

    bias = jnp.concatenate([params["bias_res"], params["bias_trans"]])           # (Cout2,)
    bias_t = jnp.tile(bias, W).reshape(1, W * Cout2).astype(jnp.float32)

    return {
        "w_res_band": to_band(w_res).astype(compute_dtype),
        "w_trans_band": to_band(w_trans).astype(compute_dtype),
        "bias": bias_t,
    }


# --------------------------------------------------------------------------------------
# Forward wrappers
# --------------------------------------------------------------------------------------
@jax.jit
def rir_unit_forward_nhwc(prepared, x_res_nhwc, x_trans_nhwc):
    """Primary (layout-friendly) entry point: NHWC in -> NHWC out, stride = 1."""
    N, H, W, Cin = x_res_nhwc.shape
    WCin = W * Cin
    WCout2 = prepared["w_res_band"].shape[2]
    Cout2 = WCout2 // W
    Cout = Cout2 // 2

    # Contiguous NHWC -> (N, H, W*Cin) is a metadata-only reshape (no HBM pass).
    xr = x_res_nhwc.reshape(N, H, WCin)
    xt = x_trans_nhwc.reshape(N, H, WCin)

    out = pl.pallas_call(
        _rir_kernel,
        out_shape=jax.ShapeDtypeStruct((N, H, WCout2), x_res_nhwc.dtype),
        grid_spec=pltpu.PrefetchScalarGridSpec(
            num_scalar_prefetch=0,
            grid=(N,),
            in_specs=[
                pl.BlockSpec((1, H, WCin), lambda n: (n, 0, 0)),
                pl.BlockSpec((1, H, WCin), lambda n: (n, 0, 0)),
                pl.BlockSpec((3, WCin, WCout2), lambda n: (0, 0, 0)),
                pl.BlockSpec((3, WCin, WCout2), lambda n: (0, 0, 0)),
                pl.BlockSpec((1, WCout2), lambda n: (0, 0)),
            ],
            out_specs=pl.BlockSpec((1, H, WCout2), lambda n: (n, 0, 0)),
            scratch_shapes=[
                pltpu.VMEM((H + 2, WCin), x_res_nhwc.dtype),   # row-padded x_res
                pltpu.VMEM((H + 2, WCin), x_res_nhwc.dtype),   # row-padded x_trans
            ],
        ),
        compiler_params=pltpu.CompilerParams(
            dimension_semantics=("parallel",),
        ),
    )(xr, xt, prepared["w_res_band"], prepared["w_trans_band"], prepared["bias"])

    out = out.reshape(N, H, W, Cout2)
    return out[..., :Cout], out[..., Cout:]


@jax.jit
def rir_unit_forward(prepared, x_res_nchw, x_trans_nchw):
    """PyTorch-layout shim: NCHW in -> NCHW out (transposes should be fused into the neighbours
    in a real pipeline; prefer rir_unit_forward_nhwc)."""
    xr = jnp.transpose(x_res_nchw, (0, 2, 3, 1))
    xt = jnp.transpose(x_trans_nchw, (0, 2, 3, 1))
    y_res, y_trans = rir_unit_forward_nhwc(prepared, xr, xt)
    return jnp.transpose(y_res, (0, 3, 1, 2)), jnp.transpose(y_trans, (0, 3, 1, 2))


# --------------------------------------------------------------------------------------
# Pure-JAX reference
# --------------------------------------------------------------------------------------
def _rir_unit_reference(params, x_res, x_trans):
    """Pure-JAX reference replicating RiRUnit.forward (stride=1, BN in inference mode)."""
    prec = jax.lax.Precision.HIGHEST

    def conv3x3(x, w_hwio):
        return jax.lax.conv_general_dilated(
            x, w_hwio, (1, 1), ((1, 1), (1, 1)),
            dimension_numbers=("NCHW", "HWIO", "NCHW"), precision=prec)

    def conv1x1(x, w_hwio):
        return jax.lax.conv_general_dilated(
            x, w_hwio, (1, 1), ((0, 0), (0, 0)),
            dimension_numbers=("NCHW", "HWIO", "NCHW"), precision=prec)

    x_id = conv1x1(x_res, params["w_id"]) if "w_id" in params else x_res
    y_res = conv3x3(x_res, params["w_res_cross"])
    y_trans = conv3x3(x_trans, params["w_trans_cross"])
    xr = conv3x3(x_res, params["w_res_pass"]) + x_id + y_trans
    xt = conv3x3(x_trans, params["w_trans_pass"]) + y_res
    sr = params["scale_res"][None, :, None, None]
    br = params["bias_res"][None, :, None, None]
    st = params["scale_trans"][None, :, None, None]
    bt = params["bias_trans"][None, :, None, None]
    return jnp.maximum(xr * sr + br, 0.0), jnp.maximum(xt * st + bt, 0.0)


if __name__ == "__main__":
    key = jax.random.PRNGKey(0)
    kx1, kx2, kp1, kp2 = jax.random.split(key, 4)

    N, C_in, H, W = 2, 4, 16, 16
    x_res = jax.random.normal(kx1, (N, C_in, H, W), jnp.float32)
    x_trans = jax.random.normal(kx2, (N, C_in, H, W), jnp.float32)

    # bf16 MXU operands vs. an f32 Precision.HIGHEST reference: expected max abs error ~1e-2 at
    # these magnitudes, so use a 5e-2 tolerance (still far below any real tap/fold bug).
    TOL = 5e-2

    # Case 1: in_channels == out_channels, stride=1 -> identity folded into the centre tap.
    params1 = make_rir_unit_params(kp1, C_in, C_in)
    prep1 = prepare_rir_params(params1, W)
    y_res1, y_trans1 = rir_unit_forward(prep1, x_res, x_trans)
    jax.block_until_ready((y_res1, y_trans1))
    r_res1, r_trans1 = _rir_unit_reference(params1, x_res, x_trans)
    assert y_res1.shape == (N, C_in, H, W) and y_trans1.shape == (N, C_in, H, W)
    assert jnp.allclose(y_res1, r_res1, atol=TOL, rtol=TOL)
    assert jnp.allclose(y_trans1, r_trans1, atol=TOL, rtol=TOL)

    # Case 2: channel expansion -> 1x1 identity conv folded into the centre tap.
    C_out = 8
    params2 = make_rir_unit_params(kp2, C_in, C_out)
    prep2 = prepare_rir_params(params2, W)
    y_res2, y_trans2 = rir_unit_forward(prep2, x_res, x_trans)
    jax.block_until_ready((y_res2, y_trans2))
    r_res2, r_trans2 = _rir_unit_reference(params2, x_res, x_trans)
    assert y_res2.shape == (N, C_out, H, W) and y_trans2.shape == (N, C_out, H, W)
    assert jnp.allclose(y_res2, r_res2, atol=TOL, rtol=TOL)
    assert jnp.allclose(y_trans2, r_trans2, atol=TOL, rtol=TOL)

    print("KERNEL_OK")
</pallas_src>

<mosaic_0001>
module attributes {stable_mosaic.version = 11 : i64} {
  func.func @_rir_kernel(%arg0: i32, %arg1: memref<1x16x64xf32, #tpu.memory_space<vmem>>, %arg2: memref<1x16x64xf32, #tpu.memory_space<vmem>>, %arg3: memref<3x64x128xbf16, #tpu.memory_space<vmem>>, %arg4: memref<3x64x128xbf16, #tpu.memory_space<vmem>>, %arg5: memref<1x128xf32, #tpu.memory_space<vmem>>, %arg6: memref<1x16x128xf32, #tpu.memory_space<vmem>>, %arg7: memref<18x64xf32, #tpu.memory_space<vmem>>, %arg8: memref<18x64xf32, #tpu.memory_space<vmem>>) attributes {dimension_semantics = [#tpu.dimension_semantics<parallel>], iteration_bounds = array<i64: 2>, scalar_prefetch = 0 : i64, scratch_operands = 2 : i64, tpu.core_type = #tpu.core_type<tc>, window_params = [{transform_indices = @transform_0, window_bounds = array<i64: 1, 16, 64>}, {transform_indices = @transform_1, window_bounds = array<i64: 1, 16, 64>}, {pipeline_mode = #tpu.pipeline_mode<synchronous>, transform_indices = @transform_2, window_bounds = array<i64: 3, 64, 128>}, {pipeline_mode = #tpu.pipeline_mode<synchronous>, transform_indices = @transform_3, window_bounds = array<i64: 3, 64, 128>}, {pipeline_mode = #tpu.pipeline_mode<synchronous>, transform_indices = @transform_4, window_bounds = array<i64: 1, 128>}, {transform_indices = @transform_5, window_bounds = array<i64: 1, 16, 128>}]} {
    %cst = arith.constant 0.000000e+00 : f32
    %0 = vector.broadcast %cst : f32 to vector<1x64xf32>
    %c0 = arith.constant 0 : index
    %c0_0 = arith.constant 0 : index
    %1 = vector.load %arg7[%c0, %c0_0] : memref<18x64xf32, #tpu.memory_space<vmem>>, vector<1x64xf32>
    tpu.vector_store %arg7[%c0, %c0_0], %0 {strides = array<i32>} : memref<18x64xf32, #tpu.memory_space<vmem>>, vector<1x64xf32>,
    %c17 = arith.constant 17 : index
    %c0_1 = arith.constant 0 : index
    %2 = vector.load %arg7[%c17, %c0_1] : memref<18x64xf32, #tpu.memory_space<vmem>>, vector<1x64xf32>
    tpu.vector_store %arg7[%c17, %c0_1], %0 {strides = array<i32>} : memref<18x64xf32, #tpu.memory_space<vmem>>, vector<1x64xf32>,
    %c0_2 = arith.constant 0 : index
    %c0_3 = arith.constant 0 : index
    %3 = vector.load %arg8[%c0_2, %c0_3] : memref<18x64xf32, #tpu.memory_space<vmem>>, vector<1x64xf32>
    tpu.vector_store %arg8[%c0_2, %c0_3], %0 {strides = array<i32>} : memref<18x64xf32, #tpu.memory_space<vmem>>, vector<1x64xf32>,
    %c17_4 = arith.constant 17 : index
    %c0_5 = arith.constant 0 : index
    %4 = vector.load %arg8[%c17_4, %c0_5] : memref<18x64xf32, #tpu.memory_space<vmem>>, vector<1x64xf32>
    tpu.vector_store %arg8[%c17_4, %c0_5], %0 {strides = array<i32>} : memref<18x64xf32, #tpu.memory_space<vmem>>, vector<1x64xf32>,
    %c0_6 = arith.constant 0 : index
    %c0_7 = arith.constant 0 : index
    %c0_8 = arith.constant 0 : index
    %5 = vector.load %arg1[%c0_6, %c0_7, %c0_8] : memref<1x16x64xf32, #tpu.memory_space<vmem>>, vector<1x16x64xf32>
    %6 = vector.shape_cast %5 : vector<1x16x64xf32> to vector<16x64xf32>
    %c1 = arith.constant 1 : index
    %c0_9 = arith.constant 0 : index
    %7 = vector.load %arg7[%c1, %c0_9] : memref<18x64xf32, #tpu.memory_space<vmem>>, vector<16x64xf32>
    tpu.vector_store %arg7[%c1, %c0_9], %6 {strides = array<i32>} : memref<18x64xf32, #tpu.memory_space<vmem>>, vector<16x64xf32>,
    %c0_10 = arith.constant 0 : index
    %c0_11 = arith.constant 0 : index
    %c0_12 = arith.constant 0 : index
    %8 = vector.load %arg2[%c0_10, %c0_11, %c0_12] : memref<1x16x64xf32, #tpu.memory_space<vmem>>, vector<1x16x64xf32>
    %9 = vector.shape_cast %8 : vector<1x16x64xf32> to vector<16x64xf32>
    %c1_13 = arith.constant 1 : index
    %c0_14 = arith.constant 0 : index
    %10 = vector.load %arg8[%c1_13, %c0_14] : memref<18x64xf32, #tpu.memory_space<vmem>>, vector<16x64xf32>
    tpu.vector_store %arg8[%c1_13, %c0_14], %9 {strides = array<i32>} : memref<18x64xf32, #tpu.memory_space<vmem>>, vector<16x64xf32>,
    %cst_15 = arith.constant 0.000000e+00 : f32
    %11 = vector.broadcast %cst_15 : f32 to vector<16x128xf32>
    %c0_16 = arith.constant 0 : index
    %c0_17 = arith.constant 0 : index
    %12 = vector.load %arg7[%c0_16, %c0_17] : memref<18x64xf32, #tpu.memory_space<vmem>>, vector<16x64xf32>
    %13 = arith.truncf %12 : vector<16x64xf32> to vector<16x64xbf16>
    %c0_18 = arith.constant 0 : index
    %c0_19 = arith.constant 0 : index
    %c0_20 = arith.constant 0 : index
    %14 = vector.load %arg3[%c0_18, %c0_19, %c0_20] : memref<3x64x128xbf16, #tpu.memory_space<vmem>>, vector<1x64x128xbf16>
    %15 = vector.shape_cast %14 : vector<1x64x128xbf16> to vector<64x128xbf16>
    %cst_21 = arith.constant dense<0.000000e+00> : vector<16x128xf32>
    %16 = tpu.matmul %13, %15, %cst_21 {dimension_numbers = #tpu.dot_dimension_numbers<[1], [0], [0], [1], [0, 0, 1, 1], [], []>} : vector<16x64xbf16>, vector<64x128xbf16>, vector<16x128xf32> -> vector<16x128xf32>
    %17 = arith.addf %11, %16 : vector<16x128xf32>
    %c0_22 = arith.constant 0 : index
    %c0_23 = arith.constant 0 : index
    %18 = vector.load %arg8[%c0_22, %c0_23] : memref<18x64xf32, #tpu.memory_space<vmem>>, vector<16x64xf32>
    %19 = arith.truncf %18 : vector<16x64xf32> to vector<16x64xbf16>
    %c0_24 = arith.constant 0 : index
    %c0_25 = arith.constant 0 : index
    %c0_26 = arith.constant 0 : index
    %20 = vector.load %arg4[%c0_24, %c0_25, %c0_26] : memref<3x64x128xbf16, #tpu.memory_space<vmem>>, vector<1x64x128xbf16>
    %21 = vector.shape_cast %20 : vector<1x64x128xbf16> to vector<64x128xbf16>
    %cst_27 = arith.constant dense<0.000000e+00> : vector<16x128xf32>
    %22 = tpu.matmul %19, %21, %cst_27 {dimension_numbers = #tpu.dot_dimension_numbers<[1], [0], [0], [1], [0, 0, 1, 1], [], []>} : vector<16x64xbf16>, vector<64x128xbf16>, vector<16x128xf32> -> vector<16x128xf32>
    %23 = arith.addf %17, %22 : vector<16x128xf32>
    %c1_28 = arith.constant 1 : index
    %c0_29 = arith.constant 0 : index
    %24 = vector.load %arg7[%c1_28, %c0_29] : memref<18x64xf32, #tpu.memory_space<vmem>>, vector<16x64xf32>
    %25 = arith.truncf %24 : vector<16x64xf32> to vector<16x64xbf16>
    %c1_30 = arith.constant 1 : index
    %c0_31 = arith.constant 0 : index
    %c0_32 = arith.constant 0 : index
    %26 = vector.load %arg3[%c1_30, %c0_31, %c0_32] : memref<3x64x128xbf16, #tpu.memory_space<vmem>>, vector<1x64x128xbf16>
    %27 = vector.shape_cast %26 : vector<1x64x128xbf16> to vector<64x128xbf16>
    %cst_33 = arith.constant dense<0.000000e+00> : vector<16x128xf32>
    %28 = tpu.matmul %25, %27, %cst_33 {dimension_numbers = #tpu.dot_dimension_numbers<[1], [0], [0], [1], [0, 0, 1, 1], [], []>} : vector<16x64xbf16>, vector<64x128xbf16>, vector<16x128xf32> -> vector<16x128xf32>
    %29 = arith.addf %23, %28 : vector<16x128xf32>
    %c1_34 = arith.constant 1 : index
    %c0_35 = arith.constant 0 : index
    %30 = vector.load %arg8[%c1_34, %c0_35] : memref<18x64xf32, #tpu.memory_space<vmem>>, vector<16x64xf32>
    %31 = arith.truncf %30 : vector<16x64xf32> to vector<16x64xbf16>
    %c1_36 = arith.constant 1 : index
    %c0_37 = arith.constant 0 : index
    %c0_38 = arith.constant 0 : index
    %32 = vector.load %arg4[%c1_36, %c0_37, %c0_38] : memref<3x64x128xbf16, #tpu.memory_space<vmem>>, vector<1x64x128xbf16>
    %33 = vector.shape_cast %32 : vector<1x64x128xbf16> to vector<64x128xbf16>
    %cst_39 = arith.constant dense<0.000000e+00> : vector<16x128xf32>
    %34 = tpu.matmul %31, %33, %cst_39 {dimension_numbers = #tpu.dot_dimension_numbers<[1], [0], [0], [1], [0, 0, 1, 1], [], []>} : vector<16x64xbf16>, vector<64x128xbf16>, vector<16x128xf32> -> vector<16x128xf32>
    %35 = arith.addf %29, %34 : vector<16x128xf32>
    %c2 = arith.constant 2 : index
    %c0_40 = arith.constant 0 : index
    %36 = vector.load %arg7[%c2, %c0_40] : memref<18x64xf32, #tpu.memory_space<vmem>>, vector<16x64xf32>
    %37 = arith.truncf %36 : vector<16x64xf32> to vector<16x64xbf16>
    %c2_41 = arith.constant 2 : index
    %c0_42 = arith.constant 0 : index
    %c0_43 = arith.constant 0 : index
    %38 = vector.load %arg3[%c2_41, %c0_42, %c0_43] : memref<3x64x128xbf16, #tpu.memory_space<vmem>>, vector<1x64x128xbf16>
    %39 = vector.shape_cast %38 : vector<1x64x128xbf16> to vector<64x128xbf16>
    %cst_44 = arith.constant dense<0.000000e+00> : vector<16x128xf32>
    %40 = tpu.matmul %37, %39, %cst_44 {dimension_numbers = #tpu.dot_dimension_numbers<[1], [0], [0], [1], [0, 0, 1, 1], [], []>} : vector<16x64xbf16>, vector<64x128xbf16>, vector<16x128xf32> -> vector<16x128xf32>
    %41 = arith.addf %35, %40 : vector<16x128xf32>
    %c2_45 = arith.constant 2 : index
    %c0_46 = arith.constant 0 : index
    %42 = vector.load %arg8[%c2_45, %c0_46] : memref<18x64xf32, #tpu.memory_space<vmem>>, vector<16x64xf32>
    %43 = arith.truncf %42 : vector<16x64xf32> to vector<16x64xbf16>
    %c2_47 = arith.constant 2 : index
    %c0_48 = arith.constant 0 : index
    %c0_49 = arith.constant 0 : index
    %44 = vector.load %arg4[%c2_47, %c0_48, %c0_49] : memref<3x64x128xbf16, #tpu.memory_space<vmem>>, vector<1x64x128xbf16>
    %45 = vector.shape_cast %44 : vector<1x64x128xbf16> to vector<64x128xbf16>
    %cst_50 = arith.constant dense<0.000000e+00> : vector<16x128xf32>
    %46 = tpu.matmul %43, %45, %cst_50 {dimension_numbers = #tpu.dot_dimension_numbers<[1], [0], [0], [1], [0, 0, 1, 1], [], []>} : vector<16x64xbf16>, vector<64x128xbf16>, vector<16x128xf32> -> vector<16x128xf32>
    %47 = arith.addf %41, %46 : vector<16x128xf32>
    %c0_51 = arith.constant 0 : index
    %c0_52 = arith.constant 0 : index
    %48 = vector.load %arg5[%c0_51, %c0_52] : memref<1x128xf32, #tpu.memory_space<vmem>>, vector<1x128xf32>
    %49 = vector.broadcast %48 : vector<1x128xf32> to vector<16x128xf32>
    %50 = arith.addf %47, %49 : vector<16x128xf32>
    %cst_53 = arith.constant 0.000000e+00 : f32
    %51 = vector.broadcast %cst_53 : f32 to vector<16x128xf32>
    %52 = arith.maximumf %50, %51 : vector<16x128xf32>
    %c0_54 = arith.constant 0 : index
    %c0_55 = arith.constant 0 : index
    %c0_56 = arith.constant 0 : index
    %53 = vector.load %arg6[%c0_54, %c0_55, %c0_56] : memref<1x16x128xf32, #tpu.memory_space<vmem>>, vector<1x16x128xf32>
    %54 = vector.shape_cast %53 : vector<1x16x128xf32> to vector<16x128xf32>
    %55 = vector.shape_cast %52 : vector<16x128xf32> to vector<1x16x128xf32>
    tpu.vector_store %arg6[%c0_54, %c0_55, %c0_56], %55 {strides = array<i32>} : memref<1x16x128xf32, #tpu.memory_space<vmem>>, vector<1x16x128xf32>,
    return
  }
  func.func @transform_0(%arg0: i32) -> (i32, i32, i32) {
    %c0_i32 = arith.constant 0 : i32
    %c0_i32_0 = arith.constant 0 : i32
    %c0_i32_1 = arith.constant 0 : i32
    return %arg0, %c0_i32, %c0_i32_0 : i32, i32, i32
  }
  func.func @transform_1(%arg0: i32) -> (i32, i32, i32) {
    %c0_i32 = arith.constant 0 : i32
    %c0_i32_0 = arith.constant 0 : i32
    %c0_i32_1 = arith.constant 0 : i32
    return %arg0, %c0_i32, %c0_i32_0 : i32, i32, i32
  }
  func.func @transform_2(%arg0: i32) -> (i32, i32, i32) {
    %c0_i32 = arith.constant 0 : i32
    %c0_i32_0 = arith.constant 0 : i32
    %c0_i32_1 = arith.constant 0 : i32
    %c0_i32_2 = arith.constant 0 : i32
    return %c0_i32, %c0_i32_0, %c0_i32_1 : i32, i32, i32
  }
  func.func @transform_3(%arg0: i32) -> (i32, i32, i32) {
    %c0_i32 = arith.constant 0 : i32
    %c0_i32_0 = arith.constant 0 : i32
    %c0_i32_1 = arith.constant 0 : i32
    %c0_i32_2 = arith.constant 0 : i32
    return %c0_i32, %c0_i32_0, %c0_i32_1 : i32, i32, i32
  }
  func.func @transform_4(%arg0: i32) -> (i32, i32) {
    %c0_i32 = arith.constant 0 : i32
    %c0_i32_0 = arith.constant 0 : i32
    %c0_i32_1 = arith.constant 0 : i32
    return %c0_i32, %c0_i32_0 : i32, i32
  }
  func.func @transform_5(%arg0: i32) -> (i32, i32, i32) {
    %c0_i32 = arith.constant 0 : i32
    %c0_i32_0 = arith.constant 0 : i32
    %c0_i32_1 = arith.constant 0 : i32
    return %arg0, %c0_i32, %c0_i32_0 : i32, i32, i32
  }
}

</mosaic_0001>

<bundles_post_ra>
// kernel: rir_unit_forward_nhwc.1
= control target key start
LH: loop header
LB: loop body
LE: loop exit
PB: predicated region body
PF: predicated region fallthrough
CT: control target
= control target key end

     0   :  { %s1081_s18 = smov 0   ;;  %s1231_s0 = inlined_call_operand.vmem [shape: f32[2,16,64], index: 0, kind: input, shape index: {}]   ;;  %s1232_s1 = inlined_call_operand.vmem [shape: f32[2,16,64], index: 1, kind: input, shape index: {}]   ;;  %s1233_s2 = inlined_call_operand.vmem [shape: bf16[3,64,128], index: 2, kind: input, shape index: {}]   ;;  %s1234_s3 = inlined_call_operand.vmem [shape: bf16[3,64,128], index: 3, kind: input, shape index: {}]   ;;  %s1235_s4 = inlined_call_operand.vmem [shape: f32[1,128], index: 4, kind: input, shape index: {}]   ;;  %s1236_s5 = inlined_call_operand.vmem [shape: f32[2,16,128], index: 5, kind: output, shape index: {}]  }
   0x1 LB: > { %s826_s19 = sadd.s32 4294967295, %s1047_s18   ;;  %p830_p0 = scmp.ge.s32.totalorder %s1047_s18, 1  ;;  %s1047_s18 = sphi %s1081_s18, %s15_s18  }
   0x2   : > { %p197_p1 = scmp.lt.s32.totalorder %s1047_s18, 3 }
   0x4   : > { %p198_p2 = pnand %p830_p0, %p197_p1 }
   0x5   : > { %p230_p3 = scmp.lt.s32.totalorder (!%p198_p2), %s826_s19, 1 }
   0x6   : > { %201 = sbr.rel (%p198_p2) target bundleno = 266 (0x10a), region = 40 }
   0xb   : > { %v1017_v0 = vld [vmem:[%s1234_s3 + $0x18] sm:$0xff]   ;;  %v1049_v1 = vmov 0.0   ;;  %v1019_v3 = vld [vmem:[%s1234_s3 + $0x10] sm:$0xff]   ;;  %vm1050_vm0 = vmmov 0   ;;  %vm246_vm1 = vcmask 516096   ;;  %s1238_s19 = smov (!%p230_p3, %s826_s19), 1 }
   0xc   : > { %935 = vmatprep.subr.bf16.mxu0 %v1049_v1  ;;  %947 = vmatprep.subr.bf16.mxu1 %v1049_v1  ;;  %v1018_v2 = vld [vmem:[%s1233_s2 + $0x18] sm:$0xff]   ;;  %v1020_v4 = vld [vmem:[%s1233_s2 + $0x10] sm:$0xff]   ;;  %249 = vst.msk [vmem:[#allocation3] sm:$0x1] %vm246_vm1, %v1049_v1  ;;  %247 = vst.msk [vmem:[#allocation2] sm:$0x1] %vm246_vm1, %v1049_v1 }
   0xd   : > { %936 = vmatpush3.bf16.msra.mxu0 %v1017_v0  ;;  %943 = vmatprep.mubr.msk.bf16.mxu0 %vm1050_vm0, %v1049_v1  ;;  %248 = vst.msk [vmem:[#allocation2 + $0x11] sm:$0x1] %vm246_vm1, %v1049_v1  ;;  %250 = vst.msk [vmem:[#allocation3 + $0x11] sm:$0x1] %vm246_vm1, %v1049_v1  ;;  %v1021_v5 = vld [vmem:[%s1234_s3 + $0x8] sm:$0xff]   ;;  %s1116_s30 = sshll.u32 %s1238_s19, 4 }
   0xe   : > { %948 = vmatpush3.bf16.msra.mxu1 %v1018_v2  ;;  %937 = vmatprep.subr.bf16.mxu0 %v1049_v1  ;;  %vm253_vm2 = vcmask 523264   ;;  %v1022_v6 = vld [vmem:[%s1233_s2 + $0x8] sm:$0xff]   ;;  %s239_s10 = scalar_lea.vmem %s1232_s1, %s1116_s30  ;;  %s234_s13 = scalar_lea.vmem %s1231_s0, %s1116_s30  ;;  %v1023_v11 = vld [vmem:[%s1234_s3] sm:$0xff]   ;;  %v1025_v13 = vld [vmem:[%s1233_s2 + $0x38] sm:$0xff]  }
   0xf   : > { %949 = vmatprep.subr.bf16.mxu1 %v1049_v1  ;;  %955 = vmatprep.mubr.msk.bf16.mxu1 %vm1050_vm0, %v1049_v1  ;;  %v256_v7 = vld [vmem:[%s239_s10] sm:$0xff]  ;;  %v257_v8 = vld [vmem:[%s239_s10 + $0x8] sm:$0xff]  ;;  %v1026_v19 = vld [vmem:[%s1234_s3 + $0x38] sm:$0xff]   ;;  %s244_s8 = scalar_lea.vmem %s1236_s5, %s1116_s30 }
  0x10   : > { %v251_v9 = vld [vmem:[%s234_s13] sm:$0xff]  ;;  %258 = vst.msk [vmem:[#allocation3 + $0x1] sm:$0xff] %vm253_vm2, %v256_v7  ;;  %259 = vst.msk [vmem:[#allocation3 + $0x9] sm:$0xff] %vm253_vm2, %v257_v8  ;;  %v252_v10 = vld [vmem:[%s234_s13 + $0x8] sm:$0xff] }
  0x11   : > { %938 = vmatpush3.bf16.msra.mxu0 %v1019_v3  ;;  %254 = vst.msk [vmem:[#allocation2 + $0x1] sm:$0xff] %vm253_vm2, %v251_v9  ;;  %255 = vst.msk [vmem:[#allocation2 + $0x9] sm:$0xff] %vm253_vm2, %v252_v10  ;;  %v1024_v12 = vld [vmem:[%s1233_s2] sm:$0xff]   ;;  %v1027_v21 = vld [vmem:[%s1233_s2 + $0x30] sm:$0xff]  }
  0x12   : > { %950 = vmatpush3.bf16.msra.mxu1 %v1020_v4  ;;  %939 = vmatprep.subr.bf16.mxu0 %v1049_v1  ;;  %v1028_v22 = vld [vmem:[%s1234_s3 + $0x30] sm:$0xff]   ;;  %v1029_v23 = vld [vmem:[%s1233_s2 + $0x28] sm:$0xff]   ;;  %v1031_v25 = vld [vmem:[%s1233_s2 + $0x20] sm:$0xff]  }
  0x13   : > { %951 = vmatprep.subr.bf16.mxu1 %v1049_v1  ;;  %v1030_v24 = vld [vmem:[%s1234_s3 + $0x28] sm:$0xff]   ;;  %v1032_v28 = vld [vmem:[%s1234_s3 + $0x20] sm:$0xff]   ;;  %v1033_v33 = vld [vmem:[%s1233_s2 + $0x58] sm:$0xff]  }
  0x14   : > { %v1034_v34 = vld [vmem:[%s1234_s3 + $0x58] sm:$0xff]   ;;  %v1035_v35 = vld [vmem:[%s1233_s2 + $0x50] sm:$0xff]   ;;  %v1037_v37 = vld [vmem:[%s1233_s2 + $0x48] sm:$0xff]  }
  0x15   : > { %940 = vmatpush3.bf16.msra.mxu0 %v1021_v5  ;;  %v1036_v36 = vld [vmem:[%s1234_s3 + $0x50] sm:$0xff]   ;;  %v1038_v38 = vld [vmem:[%s1234_s3 + $0x48] sm:$0xff]   ;;  %v1039_v39 = vld [vmem:[%s1233_s2 + $0x40] sm:$0xff]  }
  0x16   : > { %952 = vmatpush3.bf16.msra.mxu1 %v1022_v6  ;;  %941 = vmatprep.subr.bf16.mxu0 %v1049_v1  ;;  %v1040_v42 = vld [vmem:[%s1234_s3 + $0x40] sm:$0xff]  }
  0x17   : > { %953 = vmatprep.subr.bf16.mxu1 %v1049_v1  ;;  %v271_v14 = vld [vmem:[#allocation3] sm:$0xff]  ;;  %v272_v15 = vld [vmem:[#allocation3 + $0x8] sm:$0xff] }
  0x18   : > { %v260_v16 = vld [vmem:[#allocation2] sm:$0xff]  ;;  %v273_v17 = vpack.c.bf16 %v272_v15, %v271_v14  ;;  %v261_v18 = vld [vmem:[#allocation2 + $0x8] sm:$0xff] }
  0x19   : > { %942 = vmatpush3.bf16.msra.mxu0 %v1023_v11  ;;  %v262_v20 = vpack.c.bf16 %v261_v18, %v260_v16  ;;  %v418_v26 = vld [vmem:[#allocation2 + $0x1] sm:$0xff]  ;;  %v419_v27 = vld [vmem:[#allocation2 + $0x9] sm:$0xff]  ;;  %v500_v29 = vld [vmem:[#allocation3 + $0x1] sm:$0xff] }
  0x1a   : > { %954 = vmatpush3.bf16.msra.mxu1 %v1024_v12  ;;  %959 = vmatprep.subr.bf16.mxu0 %v1049_v1  ;;  %v501_v30 = vld [vmem:[#allocation3 + $0x9] sm:$0xff]  ;;  %v420_v31 = vpack.c.bf16 %v419_v27, %v418_v26  ;;  %v583_v41 = vld [vmem:[#allocation2 + $0xa] sm:$0xff]  ;;  %v899_v7 = vld [vmem:[%s1235_s4] ss:$0 sm:$0xff] }
  0x1b   : > { %971 = vmatprep.subr.bf16.mxu1 %v1049_v1  ;;  %v502_v32 = vpack.c.bf16 %v501_v30, %v500_v29  ;;  %v582_v40 = vld [vmem:[#allocation2 + $0x2] sm:$0xff]  ;;  %v664_v43 = vld [vmem:[#allocation3 + $0x2] sm:$0xff] }
  0x1c   : > { %944 = vmatmul.mubr.msk.bf16.vlgmr.msra.gmra.mxu0 %vm253_vm2, %v273_v17  ;;  %v665_v44 = vld [vmem:[#allocation3 + $0xa] sm:$0xff]  ;;  %v584_v45 = vpack.c.bf16 %v583_v41, %v582_v40 }
  0x1d   : > { %956 = vmatmul.mubr.msk.bf16.vlgmr.msra.gmra.mxu1 %vm253_vm2, %v262_v20  ;;  %960 = vmatpush3.bf16.msra.mxu0 %v1025_v13  ;;  %v666_v46 = vpack.c.bf16 %v665_v44, %v664_v43 }
  0x1e   : > { %972 = vmatpush3.bf16.msra.mxu1 %v1026_v19  ;;  %961 = vmatprep.subr.bf16.mxu0 %v1049_v1 }
  0x1f   : > { %973 = vmatprep.subr.bf16.mxu1 %v1049_v1  ;;  %967 = vmatprep.mubr.msk.bf16.mxu0 %vm1050_vm0, %v1049_v1 }
  0x20   : > { %979 = vmatprep.mubr.msk.bf16.mxu1 %vm1050_vm0, %v1049_v1 }
  0x21   : > { %962 = vmatpush3.bf16.msra.mxu0 %v1027_v21 }
  0x22   : > { %974 = vmatpush3.bf16.msra.mxu1 %v1028_v22  ;;  %963 = vmatprep.subr.bf16.mxu0 %v1049_v1 }
  0x23   : > { %975 = vmatprep.subr.bf16.mxu1 %v1049_v1 }
  0x25   : > { %964 = vmatpush3.bf16.msra.mxu0 %v1029_v23 }
  0x26   : > { %976 = vmatpush3.bf16.msra.mxu1 %v1030_v24  ;;  %965 = vmatprep.subr.bf16.mxu0 %v1049_v1 }
  0x27   : > { %977 = vmatprep.subr.bf16.mxu1 %v1049_v1 }
  0x29   : > { %966 = vmatpush3.bf16.msra.mxu0 %v1031_v25 }
  0x2a   : > { %978 = vmatpush3.bf16.msra.mxu1 %v1032_v28  ;;  %983 = vmatprep.subr.bf16.mxu0 %v1049_v1 }
  0x2b   : > { %995 = vmatprep.subr.bf16.mxu1 %v1049_v1 }
  0x2c   : > { %968 = vmatmul.mubr.msk.bf16.vlgmr.msra.gmra.mxu0 %vm253_vm2, %v420_v31 }
  0x2d   : > { %980 = vmatmul.mubr.msk.bf16.vlgmr.msra.gmra.mxu1 %vm253_vm2, %v502_v32  ;;  %984 = vmatpush3.bf16.msra.mxu0 %v1033_v33 }
  0x2e   : > { %996 = vmatpush3.bf16.msra.mxu1 %v1034_v34  ;;  %985 = vmatprep.subr.bf16.mxu0 %v1049_v1 }
  0x2f   : > { %997 = vmatprep.subr.bf16.mxu1 %v1049_v1  ;;  %991 = vmatprep.mubr.msk.bf16.mxu0 %vm1050_vm0, %v1049_v1 }
  0x30   : > { %1003 = vmatprep.mubr.msk.bf16.mxu1 %vm1050_vm0, %v1049_v1 }
  0x31   : > { %986 = vmatpush3.bf16.msra.mxu0 %v1035_v35 }
  0x32   : > { %998 = vmatpush3.bf16.msra.mxu1 %v1036_v36  ;;  %987 = vmatprep.subr.bf16.mxu0 %v1049_v1 }
  0x33   : > { %999 = vmatprep.subr.bf16.mxu1 %v1049_v1 }
  0x35   : > { %988 = vmatpush3.bf16.msra.mxu0 %v1037_v37 }
  0x36   : > { %1000 = vmatpush3.bf16.msra.mxu1 %v1038_v38  ;;  %989 = vmatprep.subr.bf16.mxu0 %v1049_v1 }
  0x37   : > { %1001 = vmatprep.subr.bf16.mxu1 %v1049_v1 }
  0x39   : > { %990 = vmatpush3.bf16.msra.mxu0 %v1039_v39 }
  0x3a   : > { %1002 = vmatpush3.bf16.msra.mxu1 %v1040_v42 }
  0x3c   : > { %992 = vmatmul.mubr.msk.bf16.vlgmr.msra.gmra.mxu0 %vm253_vm2, %v584_v45 }
  0x3d   : > { %1004 = vmatmul.mubr.msk.bf16.vlgmr.msra.gmra.mxu1 %vm253_vm2, %v666_v46 }
  0xdc   : > { %v343_v47 = vpop.f32.mrf.mxu0 }
  0xdd   : > { %v411_v48 = vpop.f32.mrf.mxu1 }
  0xde   : > { %v945_v49 = vpop.f32.mrf.mxu0  ;;  %v412_v63 = vadd.f32 %v411_v48, %v343_v47 }
  0xdf   : > { %v957_v50 = vpop.f32.mrf.mxu1 }
  0xe0   : > { %v346_v51 = vpop.f32.mrf.mxu0 }
  0xe1   : > { %v414_v52 = vpop.f32.mrf.mxu1 }
  0xe2   : > { %v946_v53 = vpop.f32.mrf.mxu0  ;;  %v415_v1 = vadd.f32 %v414_v52, %v346_v51 }
  0xe3   : > { %v958_v54 = vpop.f32.mrf.mxu1 }
  0xec   : > { %v491_v55 = vpop.f32.mrf.mxu0 }
  0xed   : > { %v573_v56 = vpop.f32.mrf.mxu1  ;;  %v498_v0 = vadd.f32 %v491_v55, %v412_v63 }
  0xee   : > { %v969_v57 = vpop.f32.mrf.mxu0 }
  0xef   : > { %v981_v58 = vpop.f32.mrf.mxu1  ;;  %v580_v2 = vadd.f32 %v573_v56, %v498_v0 }
  0xf0   : > { %v494_v59 = vpop.f32.mrf.mxu0 }
  0xf1   : > { %v576_v60 = vpop.f32.mrf.mxu1  ;;  %v499_v3 = vadd.f32 %v494_v59, %v415_v1 }
  0xf2   : > { %v970_v61 = vpop.f32.mrf.mxu0 }
  0xf3   : > { %v982_v62 = vpop.f32.mrf.mxu1  ;;  %v581_v9 = vadd.f32 %v576_v60, %v499_v3 }
  0xfc   : > { %v655_v4 = vpop.f32.mrf.mxu0 }
  0xfd   : > { %v662_v5 = vadd.f32 %v655_v4, %v580_v2  ;;  %v737_v6 = vpop.f32.mrf.mxu1 }
  0xfe   : > { %v993_v8 = vpop.f32.mrf.mxu0 }
  0xff   : > { %v744_v10 = vadd.f32 %v737_v6, %v662_v5  ;;  %v1005_v11 = vpop.f32.mrf.mxu1 }
 0x100   : > { %v658_v12 = vpop.f32.mrf.mxu0 }
 0x101   : > { %v753_v13 = vadd.f32 %v899_v7, %v744_v10  ;;  %v663_v14 = vadd.f32 %v658_v12, %v581_v9  ;;  %v740_v15 = vpop.f32.mrf.mxu1 }
 0x102   : > { %v994_v16 = vpop.f32.mrf.mxu0 }
 0x103   : > { %v755_v17 = vmax.f32 %v753_v13, 0.0  ;;  %v745_v18 = vadd.f32 %v740_v15, %v663_v14  ;;  %v1006_v19 = vpop.f32.mrf.mxu1 }
 0x105   : > { %757 = vst [vmem:[%s244_s8] sm:$0xff] %v755_v17  ;;  %v754_v20 = vadd.f32 %v899_v7, %v745_v18 }
 0x107   : > { %v756_v21 = vmax.f32 %v754_v20, 0.0 }
 0x109   : > { %758 = vst [vmem:[%s244_s8 + $0x8] sm:$0xff] %v756_v21 }
 0x10a PF: > { %s15_s18 = sadd.s32 1, %s1047_s18  }
 0x10b   : > { %p12_p4 = scmp.ge.s32.totalorder %s15_s18, 4  }
 0x10d   :  { %14 = sbr.rel (!%p12_p4) target bundleno = 1 (0x1), region = 77 }

</bundles_post_ra>
